<compile_context>
chip_gen: v5e
topology: v5e:2x2
jax: 0.10.0
libtpu: 0.0.40
codegen_flags: <defaults>
</compile_context>

<pallas_src>
import jax
import jax.numpy as jnp
from jax.experimental import pallas as pl
from jax.experimental.pallas import tpu as pltpu


def se_kernel(x_ref, w1_ref, w2_ref, o_ref):
    # x_ref/o_ref: (Bt, C, HW) ; w1_ref: (C, Cr) ; w2_ref: (Cr, C)
    hw = x_ref.shape[-1]

    # Global average pool over the spatial (lane) axis with an explicit f32
    # accumulator; does NOT materialize an f32 copy of the big x tile.
    y = jnp.sum(x_ref[...], axis=-1, dtype=jnp.float32) * jnp.float32(1.0 / hw)

    # fc1 (no bias) + ReLU -> (Bt, Cr).  Tiny matmul; accumulate in f32.
    z = jnp.maximum(
        jnp.dot(y, w1_ref[...], preferred_element_type=jnp.float32), 0.0)

    # fc2 (no bias) + Sigmoid -> (Bt, C).  Sigmoid maps to EUP (cheap).
    s = jax.nn.sigmoid(
        jnp.dot(z, w2_ref[...], preferred_element_type=jnp.float32))

    # Re-read x from the VMEM ref for the scale-multiply and broadcast the
    # per-(batch, channel) scale over the spatial lane axis (lane broadcast is
    # cheap on the VPU).
    scale = s.astype(x_ref.dtype)[:, :, None]
    o_ref[...] = (x_ref[...] * scale).astype(o_ref.dtype)


def _pick_batch_tile(B, row_bytes, tile_bytes_target):
    """Largest batch tile <= target bytes; prefer an even divisor of B."""
    bt = max(1, min(B, tile_bytes_target // max(row_bytes, 1)))
    if B % bt == 0:
        return bt
    # Largest divisor of B not exceeding bt; accept it only if it does not
    # shrink the tile by more than 2x (keeps per-step overhead amortized).
    for cand in range(bt, 0, -1):
        if B % cand == 0:
            return cand if cand * 2 >= bt else bt
    return bt


def se_layer(x_nchw, w1, w2, *, tile_bytes_target=6 * 1024 * 1024):
    """x_nchw: (B, C, H, W); w1: (C, C//r); w2: (C//r, C)."""
    B, C, H, W = x_nchw.shape
    HW = H * W
    Cr = w1.shape[1]
    x3 = x_nchw.reshape(B, C, HW)
    # TODO(synk): for GhostNet stages where HW is not a 128-multiple (7x7,
    # 14x14) the stores are masked (vst.msk).  Padding HW up to 128 in the
    # wrapper would make stores lane-dense but costs an extra HBM pass for the
    # pad/slice, which is a net loss for this purely bandwidth-bound op.

    itemsize = jnp.dtype(x_nchw.dtype).itemsize
    row_bytes = C * HW * itemsize

    # Batch tile: target ~6 MiB per tile buffer so 2x(in) + 2x(out)
    # double-buffers stay well inside v7x's 64 MiB VMEM (and are trivially
    # fine on v5e/v6e's 128 MiB).
    Bt = _pick_batch_tile(B, row_bytes, tile_bytes_target)
    nb = pl.cdiv(B, Bt)

    w_itemsize = jnp.dtype(w1.dtype).itemsize
    w_bytes = (C * Cr + Cr * C) * w_itemsize
    tile_buf_bytes = Bt * C * HW * itemsize
    # Room for double-buffered in + out tiles, resident weights, and slack.
    vmem_limit = int(min(48 * 1024 * 1024,
                         max(16 * 1024 * 1024,
                             5 * tile_buf_bytes + 2 * w_bytes)))

    cost = pl.CostEstimate(
        flops=2 * B * (C * Cr + Cr * C) + B * C * HW,   # two tiny matmuls + scale-mul
        transcendentals=B * C,                          # sigmoid
        bytes_accessed=2 * B * C * HW * itemsize + w_bytes,
    )

    out3 = pl.pallas_call(
        se_kernel,
        out_shape=jax.ShapeDtypeStruct((B, C, HW), x_nchw.dtype),
        grid=(nb,),
        in_specs=[
            pl.BlockSpec((Bt, C, HW), lambda b: (b, 0, 0)),
            pl.BlockSpec((C, Cr), lambda b: (0, 0)),   # weights stay resident
            pl.BlockSpec((Cr, C), lambda b: (0, 0)),
        ],
        out_specs=pl.BlockSpec((Bt, C, HW), lambda b: (b, 0, 0)),
        compiler_params=pltpu.CompilerParams(
            dimension_semantics=("parallel",),   # megacore shards the batch axis
            vmem_limit_bytes=vmem_limit,
        ),
        cost_estimate=cost,
    )(x3, w1, w2)

    return out3.reshape(B, C, H, W)


def se_layer_ref(x_nchw, w1, w2):
    """Pure-JAX reference mirroring the PyTorch forward."""
    y = jnp.mean(x_nchw, axis=(2, 3))                 # (B, C)
    z = jnp.maximum(y @ w1, 0.0)                      # (B, Cr)
    s = jax.nn.sigmoid(z @ w2)                        # (B, C)
    return x_nchw * s[:, :, None, None]


if __name__ == "__main__":
    B, C, H, W = 2, 4, 16, 16
    reduction = 4
    Cr = C // reduction

    key = jax.random.PRNGKey(0)
    kx, k1, k2 = jax.random.split(key, 3)

    x = jax.random.normal(kx, (B, C, H, W), dtype=jnp.float32)
    # Deterministic synthetic weights (shapes match nn.Linear(C, C//r) /
    # nn.Linear(C//r, C) with bias=False, stored transposed for row-major matmul).
    w1 = jax.random.normal(k1, (C, Cr), dtype=jnp.float32) * 0.5
    w2 = jax.random.normal(k2, (Cr, C), dtype=jnp.float32) * 0.5

    out = se_layer(x, w1, w2)
    out = jax.block_until_ready(out)

    ref = se_layer_ref(x, w1, w2)
    assert out.shape == (B, C, H, W)
    assert jnp.allclose(out, ref, atol=1e-5, rtol=1e-5), "mismatch vs reference"

    print("KERNEL_OK")
</pallas_src>

<mosaic_0001>
module attributes {stable_mosaic.version = 11 : i64} {
  func.func @se_kernel(%arg0: i32, %arg1: memref<2x4x256xf32, #tpu.memory_space<vmem>>, %arg2: memref<4x1xf32, #tpu.memory_space<vmem>>, %arg3: memref<1x4xf32, #tpu.memory_space<vmem>>, %arg4: memref<2x4x256xf32, #tpu.memory_space<vmem>>) attributes {dimension_semantics = [#tpu.dimension_semantics<parallel>], iteration_bounds = array<i64: 1>, scalar_prefetch = 0 : i64, scratch_operands = 0 : i64, tpu.core_type = #tpu.core_type<tc>, window_params = [{transform_indices = @transform_0, window_bounds = array<i64: 2, 4, 256>}, {pipeline_mode = #tpu.pipeline_mode<synchronous>, transform_indices = @transform_1, window_bounds = array<i64: 4, 1>}, {pipeline_mode = #tpu.pipeline_mode<synchronous>, transform_indices = @transform_2, window_bounds = array<i64: 1, 4>}, {transform_indices = @transform_3, window_bounds = array<i64: 2, 4, 256>}]} {
    %c0 = arith.constant 0 : index
    %c0_0 = arith.constant 0 : index
    %c0_1 = arith.constant 0 : index
    %0 = vector.load %arg1[%c0, %c0_0, %c0_1] : memref<2x4x256xf32, #tpu.memory_space<vmem>>, vector<2x4x256xf32>
    %cst = arith.constant dense<0.000000e+00> : vector<2x4xf32>
    %1 = vector.multi_reduction <add>, %0, %cst [2] : vector<2x4x256xf32> to vector<2x4xf32>
    %cst_2 = arith.constant 3.906250e-03 : f32
    %2 = vector.broadcast %cst_2 : f32 to vector<2x4xf32>
    %3 = arith.mulf %1, %2 : vector<2x4xf32>
    %c0_3 = arith.constant 0 : index
    %c0_4 = arith.constant 0 : index
    %4 = vector.load %arg2[%c0_3, %c0_4] : memref<4x1xf32, #tpu.memory_space<vmem>>, vector<4x1xf32>
    %cst_5 = arith.constant dense<0.000000e+00> : vector<2x1xf32>
    %5 = tpu.matmul %3, %4, %cst_5 {dimension_numbers = #tpu.dot_dimension_numbers<[1], [0], [0], [1], [0, 0, 1, 1], [], []>} : vector<2x4xf32>, vector<4x1xf32>, vector<2x1xf32> -> vector<2x1xf32>
    %cst_6 = arith.constant 0.000000e+00 : f32
    %6 = vector.broadcast %cst_6 : f32 to vector<2x1xf32>
    %7 = arith.maximumf %5, %6 : vector<2x1xf32>
    %c0_7 = arith.constant 0 : index
    %c0_8 = arith.constant 0 : index
    %8 = vector.load %arg3[%c0_7, %c0_8] : memref<1x4xf32, #tpu.memory_space<vmem>>, vector<1x4xf32>
    %cst_9 = arith.constant dense<0.000000e+00> : vector<2x4xf32>
    %9 = tpu.matmul %7, %8, %cst_9 {dimension_numbers = #tpu.dot_dimension_numbers<[1], [0], [0], [1], [0, 0, 1, 1], [], []>} : vector<2x1xf32>, vector<1x4xf32>, vector<2x4xf32> -> vector<2x4xf32>
    %10 = arith.negf %9 : vector<2x4xf32>
    %11 = math.exp %10 : vector<2x4xf32>
    %cst_10 = arith.constant 1.000000e+00 : f32
    %12 = vector.broadcast %cst_10 : f32 to vector<2x4xf32>
    %13 = arith.addf %12, %11 : vector<2x4xf32>
    %14 = arith.divf %12, %13 : vector<2x4xf32>
    %15 = vector.shape_cast %14 : vector<2x4xf32> to vector<2x4x1xf32>
    %c0_11 = arith.constant 0 : index
    %c0_12 = arith.constant 0 : index
    %c0_13 = arith.constant 0 : index
    %16 = vector.load %arg1[%c0_11, %c0_12, %c0_13] : memref<2x4x256xf32, #tpu.memory_space<vmem>>, vector<2x4x256xf32>
    %17 = vector.broadcast %15 : vector<2x4x1xf32> to vector<2x4x256xf32>
    %18 = arith.mulf %16, %17 : vector<2x4x256xf32>
    %c0_14 = arith.constant 0 : index
    %c0_15 = arith.constant 0 : index
    %c0_16 = arith.constant 0 : index
    %19 = vector.load %arg4[%c0_14, %c0_15, %c0_16] : memref<2x4x256xf32, #tpu.memory_space<vmem>>, vector<2x4x256xf32>
    tpu.vector_store %arg4[%c0_14, %c0_15, %c0_16], %18 {strides = array<i32>} : memref<2x4x256xf32, #tpu.memory_space<vmem>>, vector<2x4x256xf32>,
    return
  }
  func.func @transform_0(%arg0: i32) -> (i32, i32, i32) {
    %c0_i32 = arith.constant 0 : i32
    %c0_i32_0 = arith.constant 0 : i32
    %c0_i32_1 = arith.constant 0 : i32
    return %arg0, %c0_i32, %c0_i32_0 : i32, i32, i32
  }
  func.func @transform_1(%arg0: i32) -> (i32, i32) {
    %c0_i32 = arith.constant 0 : i32
    %c0_i32_0 = arith.constant 0 : i32
    %c0_i32_1 = arith.constant 0 : i32
    return %c0_i32, %c0_i32_0 : i32, i32
  }
  func.func @transform_2(%arg0: i32) -> (i32, i32) {
    %c0_i32 = arith.constant 0 : i32
    %c0_i32_0 = arith.constant 0 : i32
    %c0_i32_1 = arith.constant 0 : i32
    return %c0_i32, %c0_i32_0 : i32, i32
  }
  func.func @transform_3(%arg0: i32) -> (i32, i32, i32) {
    %c0_i32 = arith.constant 0 : i32
    %c0_i32_0 = arith.constant 0 : i32
    %c0_i32_1 = arith.constant 0 : i32
    return %arg0, %c0_i32, %c0_i32_0 : i32, i32, i32
  }
}

</mosaic_0001>

<bundles_post_ra>
// kernel: tpu_custom_call.1
= control target key start
LH: loop header
LB: loop body
LE: loop exit
PB: predicated region body
PF: predicated region fallthrough
CT: control target
= control target key end

     0   :  { %8 = vsyncpa [#allocation3], 0  ;;  %s311_s0 = inlined_call_operand.hbm [shape: f32[2,4,256], index: 0, kind: input, shape index: {}]   ;;  %s312_s1 = inlined_call_operand.vmem [shape: f32[4,1], index: 1, kind: input, shape index: {}]   ;;  %s313_s2 = inlined_call_operand.vmem [shape: f32[1,4], index: 2, kind: input, shape index: {}]   ;;  %s314_s3 = inlined_call_operand.hbm [shape: f32[2,4,256], index: 3, kind: output, shape index: {}]  }
   0x1   :  { %9 = vsyncpa [#allocation4], 0  ;;  %s14_s14 = sshll.u32 %s311_s0, 4  ;;  %s260_s15 = smov [#allocation2]   ;;  %s15_s14 = int_to_ptr.hbm [resolvable:$true] %s14_s14 }
   0x2   :  { %s16_s16 = sshll.u32 %s260_s15, 4  ;;  %s261_s17 = smov 128   ;;  %s17_s16 = int_to_ptr.vmem [resolvable:$true] %s16_s16 }
   0x3   :  { %s262_s18 = smov 8  }
   0x4   :  { %22 = dma.hbm_to_vmem [thread:$0]  %s15_s14, 256, %s17_s16, [#allocation3], %s261_s17, %s261_s17, %s262_s18  }
   0x5   :  { %256 = dma.done.wait [#allocation3], 256  }
   0x6   :  { %257 = vsyncadd [#allocation3], 4294967040  ;;  %v291_v0 = vld [vmem:[#allocation2] sm:$0xff]  ;;  %v293_v1 = vld [vmem:[#allocation2 + $0x8] sm:$0xff]  ;;  %vm46_vm0 = vcmask 1043456   ;;  %v62_v14 = vlaneseq  ;;  %vm66_vm1 = vcmask 1041409  }
   0x7   :  { %35 = vst [vmem:[#allocation1] ss:$2 sm:$0xff] %v291_v0  ;;  %v59_v12 = vld [vmem:[%s312_s1] sm:$0xf]  ;;  %vm68_vm2 = vcmask 31744   ;;  %vm100_vm3 = vcmask 1040384  }
   0x8   :  { %39 = vst [vmem:[#allocation1 + $0x10] ss:$2 sm:$0xff] %v293_v1  ;;  %192 = vmatpush.msk.msra.mxu0 %vm46_vm0, %v59_v12  ;;  %v63_v15 = vand.u32 127, %v62_v14  ;;  %v95_v22 = vld [vmem:[%s313_s2] sm:$0x1]  ;;  %vm96_vm4 = vcmask 7168  }
   0x9   :  { %194 = vmatpush.msk.msra.mxu1 %vm100_vm3, %v95_v22  ;;  %v145_v25 = vshrl.u32 %v62_v14, 7  ;;  %v263_v42 = vmov 839922192   ;;  %s264_s1 = smov [#allocation5]   ;;  %s179_s24 = sshll.u32 %s314_s3, 4  ;;  %s180_s24 = int_to_ptr.hbm [resolvable:$true] %s179_s24 }
   0xa   :  { %v160_v43 = vunpack.c.l.s4 %v263_v42  ;;  %s177_s2 = sshll.u32 %s264_s1, 4  ;;  %s178_s2 = int_to_ptr.vmem [resolvable:$true] %s177_s2 }
   0xb   :  { %202 = vset.pattern.permute.xlu1 %v145_v25  ;;  %203 = vset.pattern.permute.xlu0 %v145_v25 }
   0xc   :  { %v161_v44 = vunpack.c.0.s8 %v160_v43 }
   0xe   :  { %v36_v2 = vld.sshfl [vmem:[#allocation1] sm:$0xff pattern:$0x75316420]  ;;  %v37_v3 = vld.sshfl [vmem:[#allocation1 + $0x8] sm:$0xff pattern:$0x75316420] }
   0xf   :  { %v47_v4 = vsel %vm46_vm0, %v36_v2, 0.0  ;;  %v48_v5 = vsel %vm46_vm0, %v37_v3, 0.0  ;;  %v40_v7 = vld.sshfl [vmem:[#allocation1 + $0x10] sm:$0xff pattern:$0x75316420] }
  0x10   :  { %v49_v6 = vadd.f32 %v48_v5, %v47_v4  ;;  %v41_v8 = vld.sshfl [vmem:[#allocation1 + $0x18] sm:$0xff pattern:$0x75316420]  ;;  %v52_v9 = vsel %vm46_vm0, %v40_v7, 0.0 }
  0x11   :  { %v53_v10 = vsel %vm46_vm0, %v41_v8, 0.0 }
  0x12   :  { %50 = vadd.xlane.f32.xlu0 %v49_v6  ;;  %v54_v11 = vadd.f32 %v53_v10, %v52_v9 }
  0x1a   :  { %55 = vadd.xlane.f32.xlu0 %v54_v11 }
  0x85   :  { %v51_v13 = vpop.xlane.xlu0 %50 }
  0x86   :  { %v57_v16 = vmul.f32 0.00390625, %v51_v13 }
  0x88   :  { %v64_v19 = vperm.slane %v57_v16, %v63_v15 }
  0x8d   :  { %v56_v17 = vpop.xlane.xlu0 %55 }
  0x8e   :  { %v58_v18 = vmul.f32 0.00390625, %v56_v17 }
  0x90   :  { %v65_v20 = vperm.slane %v58_v18, %v63_v15 }
  0x92   :  { %v67_v21 = vsel %vm66_vm1, %v65_v20, %v64_v19 }
  0x93   :  { %193 = vmatmul.msk.f32.vlgmr.msra.gmra.mxu0 %vm68_vm2, %v67_v21 }
 0x110   :  { %v91_v23 = vpop.f32.mrf.mxu0 }
 0x111   :  { %v94_v24 = vmax.f32 %v91_v23, 0.0 }
 0x113   :  { %195 = vmatmul.msk.f32.vlgmr.msra.gmra.mxu1 %vm96_vm4, %v94_v24 }
 0x190   :  { %v121_v26 = vpop.f32.mrf.mxu1 }
 0x191   :  { %v196_v27 = vmul.f32 -1.442695, %v121_v26 }
 0x193   :  { %204 = vpow2.f32 %v196_v27 }
 0x199   :  { %v205_v28 = vpop.eup %204 }
 0x19a   :  { %v127_v29 = vadd.f32 1.0, %v205_v28 }
 0x19c   :  { %206 = vrcp.f32 %v127_v29  ;;  %v139_v33 = vand.u32 2147483648, %v127_v29  ;;  %v137_v35 = vand.u32 2147483647, %v127_v29  ;;  %vm133_vm6 = vweird.f32 %v127_v29 }
 0x19e   :  { %v140_v37 = vor.u32 1.1754944e-38, %v139_v33  ;;  %vm138_vm8 = vcmp.eq.f32.partialorder %v137_v35, 8.507059e+37 }
 0x1a2   :  { %v207_v30 = vpop.eup %206 }
 0x1a3   :  { %v129_v31 = vmul.f32 %v207_v30, %v127_v29  ;;  %vm134_vm5 = vweird.f32 %v207_v30 }
 0x1a4   :  { %vm135_vm7 = vmor %vm133_vm6, %vm134_vm5 }
 0x1a5   :  { %v130_v32 = vsub.f32 1.0, %v129_v31 }
 0x1a7   :  { %v131_v34 = vmul.f32 %v207_v30, %v130_v32 }
 0x1a9   :  { %v132_v36 = vadd.f32 %v207_v30, %v131_v34 }
 0x1ab   :  { %v136_v38 = vsel %vm135_vm7, %v207_v30, %v132_v36 }
 0x1ac   :  { %v141_v39 = vsel %vm138_vm8, %v140_v37, %v136_v38 }
 0x1ad   :  { %v143_v40 = vperm.slane %v141_v39, 0  ;;  %v150_v41 = vperm.slane %v141_v39, 1 }
 0x1af   :  { %148 = vperm.xlu1 %202, %v143_v40  }
 0x1b7   :  { %155 = vperm.xlu1 %202, %v150_v41  }
 0x221   :  { %v149_v45 = vpop.permute.xlu1 %148 }
 0x222   :  { %v162_v46 = vperm.slane %v149_v45, %v161_v44 }
 0x224   :  { %v169_v47 = vmul.f32 %v162_v46, %v291_v0 }
 0x226   :  { %171 = vst [vmem:[#allocation5] sm:$0xff] %v169_v47 }
 0x229   :  { %v156_v48 = vpop.permute.xlu1 %155 }
 0x22a   :  { %v166_v49 = vperm.slane %v156_v48, %v161_v44 }
 0x22c   :  { %v170_v50 = vmul.f32 %v166_v49, %v293_v1 }
 0x22e   :  { %172 = vst [vmem:[#allocation5 + $0x8] sm:$0xff] %v170_v50 }
 0x22f   :  { %185 = dma.vmem_to_hbm [thread:$0]  %s178_s2, 256, %s180_s24, [#allocation4], %s261_s17, %s261_s17, %s262_s18  }
 0x230   :  { %258 = dma.done.wait [#allocation4], 256  }
 0x231   :  { %259 = vsyncadd [#allocation4], 4294967040 }
 0x232   :  { %190 = vsyncpa [#allocation3], 1 }
 0x233   :  { %191 = vsyncpa [#allocation4], 1 }

</bundles_post_ra>
